<compile_context>
chip_gen: v5e
topology: v5e:2x2
jax: 0.10.0
libtpu: 0.0.40
codegen_flags: <defaults>
</compile_context>

<pallas_src>
import jax
import jax.numpy as jnp
from jax.experimental import pallas as pl
from jax.experimental.pallas import tpu as pltpu


# -----------------------------------------------------------------------------
# Path 1 (default): zero-copy identity.
# The aliased output HBM buffer already holds x's bytes at kernel entry, which
# is exactly the required result, so the kernel does nothing.
# -----------------------------------------------------------------------------
def _alias_noop_kernel(x_ref, o_ref):
    # Identity: nothing to do.  The aliased output already contains the input.
    del x_ref, o_ref


def _alias_identity(x):
    return pl.pallas_call(
        _alias_noop_kernel,
        out_shape=jax.ShapeDtypeStruct(x.shape, x.dtype),
        in_specs=[pl.BlockSpec(memory_space=pl.ANY)],
        out_specs=pl.BlockSpec(memory_space=pl.ANY),
        input_output_aliases={0: 0},
        compiler_params=pltpu.CompilerParams(has_side_effects=True),
    )(x)


# -----------------------------------------------------------------------------
# Path 2 (optional): materialized copy via direct HBM->HBM DMA.
# -----------------------------------------------------------------------------
_MAX_OUTSTANDING = 4      # overlapping DMAs in flight per grid step
_SPLIT_BYTES = 4 << 20    # above this, use a 2-step "parallel" grid (v7x: 2 TCs)


def _split_even(total, parts):
    """Static, contiguous (offset, size) chunks covering [0, total)."""
    parts = max(1, min(parts, total))
    base, rem = divmod(total, parts)
    chunks, off = [], 0
    for i in range(parts):
        size = base + (1 if i < rem else 0)
        if size > 0:
            chunks.append((off, size))
            off += size
    return chunks


def _materializing_copy(x, *, num_programs=None, max_outstanding=_MAX_OUTSTANDING):
    """Fresh copy of x: chunked HBM->HBM DMA, no VMEM round-trip, no padding."""
    shape, dtype = x.shape, x.dtype
    n = int(x.size)
    itemsize = jnp.dtype(dtype).itemsize
    nbytes = n * itemsize
    flat = x.reshape(-1)  # contiguous reshape: layout bitcast, no extra HBM pass

    if num_programs is None:
        num_programs = 2 if nbytes >= _SPLIT_BYTES else 1
    num_programs = max(1, min(num_programs, n))
    span, rem = divmod(n, num_programs)            # rem < num_programs (tiny tail)
    sub_chunks = _split_even(span, max_outstanding)  # static sizes, same per program
    n_sems = len(sub_chunks) + (1 if rem else 0)

    def kernel(x_hbm, o_hbm, sems):
        base = pl.program_id(0) * span
        copies = []
        # Issue every chunk DMA for this program, then wait: several in flight.
        for i, (off, size) in enumerate(sub_chunks):
            cp = pltpu.make_async_copy(
                x_hbm.at[pl.ds(base + off, size)],
                o_hbm.at[pl.ds(base + off, size)],
                sems.at[i])
            cp.start()
            copies.append(cp)
        if rem:
            # Static-size ragged tail (< num_programs elements), last program only.
            @pl.when(pl.program_id(0) == num_programs - 1)
            def _():
                tail = pltpu.make_async_copy(
                    x_hbm.at[pl.ds(span * num_programs, rem)],
                    o_hbm.at[pl.ds(span * num_programs, rem)],
                    sems.at[len(sub_chunks)])
                tail.start()
                tail.wait()
        for cp in copies:
            cp.wait()

    out = pl.pallas_call(
        kernel,
        out_shape=jax.ShapeDtypeStruct((n,), dtype),
        grid_spec=pltpu.PrefetchScalarGridSpec(
            num_scalar_prefetch=0,
            grid=(num_programs,),
            in_specs=[pl.BlockSpec(memory_space=pl.ANY)],
            out_specs=pl.BlockSpec(memory_space=pl.ANY),
            scratch_shapes=[pltpu.SemaphoreType.DMA((n_sems,))],
        ),
        compiler_params=pltpu.CompilerParams(
            dimension_semantics=("parallel",),
            has_side_effects=True,
        ),
        cost_estimate=pl.CostEstimate(flops=0, transcendentals=0,
                                      bytes_accessed=2 * nbytes),
    )(flat)
    return out.reshape(shape)


# -----------------------------------------------------------------------------
# Public API
# -----------------------------------------------------------------------------
def identity_transform(x, *, materialize=False):
    """Pallas identity: returns a tensor equal to x (same shape, same dtype).

    materialize=False (default): zero-traffic aliased kernel.
    materialize=True: force a fresh buffer via direct HBM->HBM DMA.
    """
    if x.ndim == 0 or x.size == 0:
        return x  # nothing for a kernel to do
    if materialize:
        return _materializing_copy(x)
    return _alias_identity(x)


class IdentityTransform:
    """Module-equivalent wrapper mirroring the PyTorch API surface."""

    def deconstruct(self, x):
        return identity_transform(x)

    def reconstruct(self, x):
        return identity_transform(x)

    def __call__(self, x):
        return identity_transform(x)

    forward = __call__


if __name__ == "__main__":
    key = jax.random.PRNGKey(0)
    k0, k1, k2 = jax.random.split(key, 3)

    mod = IdentityTransform()

    # NCHW input, zero-copy aliased path under jit.
    x = jax.random.normal(k0, (2, 4, 16, 16), dtype=jnp.float32)
    fwd = jax.jit(mod.__call__)
    y = jax.block_until_ready(fwd(x))
    assert y.shape == x.shape and y.dtype == x.dtype
    assert bool(jnp.all(y == x))

    # deconstruct / reconstruct (eager dispatch) share the same identity path.
    yd = jax.block_until_ready(mod.deconstruct(x))
    yr = jax.block_until_ready(mod.reconstruct(yd))
    assert bool(jnp.all(yr == x))

    # Misaligned odd shape: still zero-copy, no padding anywhere.
    x2 = jax.random.normal(k1, (3, 5, 7), dtype=jnp.float32)
    y2 = jax.block_until_ready(mod(x2))
    assert y2.shape == x2.shape and y2.dtype == x2.dtype
    assert bool(jnp.all(y2 == x2))

    # Materialized-copy path: direct HBM->HBM DMA, jitted.
    copy_fn = jax.jit(lambda t: identity_transform(t, materialize=True))
    y3 = jax.block_until_ready(copy_fn(x))
    assert y3.shape == x.shape and y3.dtype == x.dtype
    assert bool(jnp.all(y3 == x))

    # Exercise the 2-program parallel grid + static ragged-tail DMA branch.
    y4 = jax.block_until_ready(
        _materializing_copy(x2, num_programs=2, max_outstanding=4))
    assert bool(jnp.all(y4 == x2))

    # Sub-32-bit dtype coverage on both paths.
    x3 = jax.random.normal(k2, (2, 8, 32), dtype=jnp.bfloat16)
    y5 = jax.block_until_ready(mod(x3))
    y6 = jax.block_until_ready(identity_transform(x3, materialize=True))
    assert y5.dtype == jnp.bfloat16 and bool(jnp.all(y5 == x3))
    assert y6.dtype == jnp.bfloat16 and bool(jnp.all(y6 == x3))

    print("KERNEL_OK")
</pallas_src>

<mosaic_0001>
module attributes {stable_mosaic.version = 11 : i64} {
  func.func @_alias_noop_kernel(%arg0: memref<2x4x16x16xf32, #tpu.memory_space<any>>, %arg1: memref<2x4x16x16xf32, #tpu.memory_space<any>>) attributes {dimension_semantics = [], scalar_prefetch = 0 : i64, scratch_operands = 0 : i64, tpu.core_type = #tpu.core_type<tc>} {
    return
  }
}

</mosaic_0001>

<bundles_post_ra>
// kernel: a_call__.1
= control target key start
LH: loop header
LB: loop body
LE: loop exit
PB: predicated region body
PF: predicated region fallthrough
CT: control target
= control target key end

     0   :  { %s16_s0 = inlined_call_operand.hbm [shape: f32[2,4,16,16], index: 0, kind: input, shape index: {}, may-alias: {0,1}]   ;;  %s17_s1 = inlined_call_operand.hbm [shape: f32[2,4,16,16], index: 1, kind: output, shape index: {}, may-alias: {0,1}]  }

</bundles_post_ra>
